<compile_context>
chip_gen: v7x
topology: tpu7x:2x2x1
jax: 0.10.0
libtpu: 0.0.40
codegen_flags: <defaults>
</compile_context>

<pallas_src>
import functools

import jax
import jax.numpy as jnp
from jax import lax
from jax.experimental import pallas as pl
from jax.experimental.pallas import tpu as pltpu


# ----------------------------- fused Pallas kernel ---------------------------

def _meta_task_kernel(feat_ref, y_spt_ref, y_qry_ref, wnet_ref, bnet_ref,
                      correct_ref, *, n_support, n_way, inv_k_spt):
    f32 = jnp.float32
    bf16 = jnp.bfloat16
    tb, ntot, fdim = feat_ref.shape
    e = wnet_ref.shape[1]
    ns = n_support
    nq = ntot - ns
    c = n_way

    # Shared-weight feature linear over all TB*(Ns+Nq) rows in ONE MXU matmul
    # (bf16 operands, f32 accumulation).
    feat2 = feat_ref[...].reshape(tb * ntot, fdim)                     # bf16
    logits2 = jnp.dot(feat2, wnet_ref[...],
                      preferred_element_type=f32) + bnet_ref[...]      # [TB*Ntot,E] f32
    logits = logits2.reshape(tb, ntot, e)
    logits_s = logits[:, :ns, :].astype(bf16)                          # [TB,Ns,E]
    logits_q = logits[:, ns:, :].astype(bf16)                          # [TB,Nq,E]

    # Transposed one-hot support membership, built in-kernel from int32 labels
    # (values are exactly 0/1, so the bf16 cast is lossless).
    cls = lax.broadcasted_iota(jnp.int32, (tb, c, ns), 1)
    ohT_s = (cls == y_spt_ref[...]).astype(bf16)                       # [TB,C,Ns]

    # Prototypes = per-class support means via a batched one-hot matmul.
    protos = jnp.einsum('tcs,tse->tce', ohT_s, logits_s,
                        preferred_element_type=f32) * inv_k_spt        # [TB,C,E]

    # argmax_c of -||q - p_c||^2 == argmax_c (2 q.p_c - ||p_c||^2):
    # the ||q||^2 term is a per-row constant and log_softmax is monotone, so
    # neither changes the predicted class (the reference's accuracy).
    qp = jnp.einsum('tqe,tce->tqc', logits_q, protos.astype(bf16),
                    preferred_element_type=f32)                        # [TB,Nq,C]
    p2 = jnp.sum(protos * protos, axis=2)                              # [TB,C]
    neg = 2.0 * qp - p2[:, None, :]                                    # [TB,Nq,C]

    # First-argmax prediction (torch .max tie behaviour) + per-query hit.
    col = lax.broadcasted_iota(jnp.int32, (tb, nq, c), 2)
    mx = jnp.max(neg, axis=2, keepdims=True)
    yhat = jnp.min(jnp.where(neg >= mx, col, c), axis=2, keepdims=True)
    correct_ref[...] = (yhat == y_qry_ref[...]).astype(f32)            # [TB,Nq,1]


def _meta_tasks_pallas(feat_all, y_spt, y_qry, w_net, b_net,
                       *, n_way, k_spt, num_blocks):
    T, ntot, fdim = feat_all.shape
    ns = y_spt.shape[-1]
    nq = y_qry.shape[1]
    e = w_net.shape[1]
    tb = T // num_blocks
    kern = functools.partial(_meta_task_kernel, n_support=ns, n_way=n_way,
                             inv_k_spt=1.0 / float(k_spt))
    return pl.pallas_call(
        kern,
        out_shape=jax.ShapeDtypeStruct((T, nq, 1), jnp.float32),
        grid_spec=pltpu.PrefetchScalarGridSpec(
            num_scalar_prefetch=0,
            grid=(num_blocks,),
            in_specs=[
                pl.BlockSpec((tb, ntot, fdim), lambda g: (g, 0, 0)),
                pl.BlockSpec((tb, 1, ns), lambda g: (g, 0, 0)),
                pl.BlockSpec((tb, nq, 1), lambda g: (g, 0, 0)),
                pl.BlockSpec((fdim, e), lambda g: (0, 0)),
                pl.BlockSpec((1, e), lambda g: (0, 0)),
            ],
            out_specs=pl.BlockSpec((tb, nq, 1), lambda g: (g, 0, 0)),
        ),
        compiler_params=pltpu.CompilerParams(
            dimension_semantics=("parallel",)),
    )(feat_all, y_spt, y_qry, w_net, b_net)


# ------------------------------- host-side glue -------------------------------

def _pick_num_blocks(task_num):
    """>=2 parallel grid steps only on 2-TensorCore chips (v7x)."""
    try:
        kind = jax.devices()[0].device_kind.lower()
    except Exception:
        kind = ""
    two_tc = any(tag in kind for tag in ("v7", "7x", "tpu7"))
    if two_tc and task_num >= 2 and task_num % 2 == 0:
        return 2
    return 1


@functools.partial(jax.jit,
                   static_argnames=("n_way", "k_spt", "update_step",
                                    "num_blocks"))
def _meta_forward(feat_all, y_spt, y_qry, w_net, b_net, *,
                  n_way, k_spt, update_step, num_blocks):
    T = feat_all.shape[0]
    correct = _meta_tasks_pallas(
        feat_all.astype(jnp.bfloat16), y_spt, y_qry,
        w_net.astype(jnp.bfloat16), b_net.reshape(1, -1).astype(jnp.float32),
        n_way=n_way, k_spt=k_spt, num_blocks=num_blocks)       # [T, Nq, 1]
    # per-task accuracy, summed over tasks (reference accumulation structure)
    acc_sum = jnp.sum(jnp.mean(correct[:, :, 0], axis=1))
    # All update-step slots are mathematically identical in this forward stub:
    # fast weights equal the original weights (autograd inner loop is a TODO),
    # and the gene shift applied to both support and query cancels under the
    # translation-invariant euclidean prototype distances.
    corrects = jnp.full((update_step + 1,), acc_sum, dtype=jnp.float32)
    return corrects / T


class MetaPallas:
    def __init__(self, n_way, k_spt, k_qry, update_step,
                 feat_dim, embed_dim, gene_in, gene_hidden):
        self.n_way = n_way
        self.k_spt = k_spt
        self.k_qry = k_qry
        self.update_step = update_step
        key = jax.random.PRNGKey(42)
        k1, k2, k3 = jax.random.split(key, 3)
        # net (Classifier stand-in): linear embedding of node features.
        # TODO(synk): the DGL GNN `Classifier(config)` is not defined in the
        # snippet; a Pallas linear layer over node features stands in for it.
        self.w_net = 0.1 * jax.random.normal(k1, (feat_dim, embed_dim), jnp.float32)
        self.b_net = jnp.zeros((embed_dim,), jnp.float32)
        # net1 = mlp(config0, dim0, dim1): kept only for structural fidelity.
        # Its additive gene shift is applied to both support and query rows,
        # so with the linear stand-in it cannot change the forward output
        # (translation-invariant euclidean distances) and is not evaluated.
        self.w1 = 0.1 * jax.random.normal(k2, (gene_in, gene_hidden), jnp.float32)
        self.b1 = jnp.zeros((gene_hidden,), jnp.float32)
        self.w2 = 0.1 * jax.random.normal(k3, (gene_hidden, feat_dim), jnp.float32)
        self.b2 = jnp.zeros((feat_dim,), jnp.float32)

    def forward(self, feat_spt_list, y_spt, feat_qry_list, y_qry, g_spt,
                gene_feat):
        # TODO(synk): torch.autograd.grad inner-loop fast-weight updates and
        # the Adam meta-optimizer step are training-time autodiff/optimizer
        # ops with no forward-pass Pallas equivalent; weights stay fixed, so
        # the support-side NLL (only used to form those gradients) is skipped.
        # TODO(synk): the gene MLP output shift cancels exactly in this stub
        # (see class docstring), so g_spt / gene_feat are unused here.
        del g_spt, gene_feat
        feat_spt = jnp.stack(feat_spt_list)                          # [T,Ns,F]
        feat_qry = jnp.stack(feat_qry_list)                          # [T,Nq,F]
        feat_all = jnp.concatenate([feat_spt, feat_qry], axis=1)     # [T,Ns+Nq,F]
        y_spt_a = jnp.stack(y_spt).astype(jnp.int32)[:, None, :]     # [T,1,Ns]
        y_qry_a = jnp.stack(y_qry).astype(jnp.int32)[:, :, None]     # [T,Nq,1]
        num_blocks = _pick_num_blocks(feat_all.shape[0])
        return _meta_forward(feat_all, y_spt_a, y_qry_a,
                             self.w_net, self.b_net,
                             n_way=self.n_way, k_spt=self.k_spt,
                             update_step=self.update_step,
                             num_blocks=num_blocks)


# ----------------------------------- main -------------------------------------

if __name__ == "__main__":
    n_way, k_spt, k_qry = 2, 4, 4
    task_num, update_step = 2, 2
    feat_dim, embed_dim = 32, 32
    gene_in, gene_hidden, n_genes = 16, 32, 8

    key = jax.random.PRNGKey(0)
    keys = jax.random.split(key, 16)

    feat_spt_list = [jax.random.normal(keys[i], (n_way * k_spt, feat_dim),
                                       jnp.float32) for i in range(task_num)]
    feat_qry_list = [jax.random.normal(keys[2 + i], (n_way * k_qry, feat_dim),
                                       jnp.float32) for i in range(task_num)]
    base_spt = jnp.repeat(jnp.arange(n_way, dtype=jnp.int32), k_spt)
    base_qry = jnp.repeat(jnp.arange(n_way, dtype=jnp.int32), k_qry)
    y_spt = [jax.random.permutation(keys[4 + i], base_spt)
             for i in range(task_num)]
    y_qry = [jax.random.permutation(keys[6 + i], base_qry)
             for i in range(task_num)]
    g_spt = [[0], [1]]
    gene_feat = jax.random.normal(keys[8], (n_genes, gene_in), jnp.float32)

    meta = MetaPallas(n_way, k_spt, k_qry, update_step,
                      feat_dim, embed_dim, gene_in, gene_hidden)
    accs = meta.forward(feat_spt_list, y_spt, feat_qry_list, y_qry, g_spt,
                        gene_feat)
    jax.block_until_ready(accs)
    assert accs.shape == (update_step + 1,)
    assert bool(jnp.all(jnp.isfinite(accs)))
    assert bool(jnp.all((accs >= 0.0) & (accs <= 1.0)))
    print("KERNEL_OK")
</pallas_src>

<mosaic_0001>
module attributes {stable_mosaic.version = 11 : i64} {
  func.func @_meta_task_kernel(%arg0: i32, %arg1: memref<2x16x32xbf16, #tpu.memory_space<vmem>>, %arg2: memref<2x1x8xi32, #tpu.memory_space<vmem>>, %arg3: memref<2x8x1xi32, #tpu.memory_space<vmem>>, %arg4: memref<32x32xbf16, #tpu.memory_space<vmem>>, %arg5: memref<1x32xf32, #tpu.memory_space<vmem>>, %arg6: memref<2x8x1xf32, #tpu.memory_space<vmem>>) attributes {dimension_semantics = [#tpu.dimension_semantics<parallel>], iteration_bounds = array<i64: 1>, scalar_prefetch = 0 : i64, scratch_operands = 0 : i64, tpu.core_type = #tpu.core_type<tc>, window_params = [{transform_indices = @transform_0, window_bounds = array<i64: 2, 16, 32>}, {transform_indices = @transform_1, window_bounds = array<i64: 2, 1, 8>}, {transform_indices = @transform_2, window_bounds = array<i64: 2, 8, 1>}, {pipeline_mode = #tpu.pipeline_mode<synchronous>, transform_indices = @transform_3, window_bounds = array<i64: 32, 32>}, {pipeline_mode = #tpu.pipeline_mode<synchronous>, transform_indices = @transform_4, window_bounds = array<i64: 1, 32>}, {transform_indices = @transform_5, window_bounds = array<i64: 2, 8, 1>}]} {
    %c0 = arith.constant 0 : index
    %c0_0 = arith.constant 0 : index
    %c0_1 = arith.constant 0 : index
    %0 = vector.load %arg1[%c0, %c0_0, %c0_1] : memref<2x16x32xbf16, #tpu.memory_space<vmem>>, vector<2x16x32xbf16>
    %1 = vector.shape_cast %0 : vector<2x16x32xbf16> to vector<32x32xbf16>
    %c0_2 = arith.constant 0 : index
    %c0_3 = arith.constant 0 : index
    %2 = vector.load %arg4[%c0_2, %c0_3] : memref<32x32xbf16, #tpu.memory_space<vmem>>, vector<32x32xbf16>
    %cst = arith.constant dense<0.000000e+00> : vector<32x32xf32>
    %3 = tpu.matmul %1, %2, %cst {dimension_numbers = #tpu.dot_dimension_numbers<[1], [0], [0], [1], [0, 0, 1, 1], [], []>} : vector<32x32xbf16>, vector<32x32xbf16>, vector<32x32xf32> -> vector<32x32xf32>
    %c0_4 = arith.constant 0 : index
    %c0_5 = arith.constant 0 : index
    %4 = vector.load %arg5[%c0_4, %c0_5] : memref<1x32xf32, #tpu.memory_space<vmem>>, vector<1x32xf32>
    %5 = vector.broadcast %4 : vector<1x32xf32> to vector<32x32xf32>
    %6 = arith.addf %3, %5 : vector<32x32xf32>
    %7 = vector.shape_cast %6 : vector<32x32xf32> to vector<2x16x32xf32>
    %8 = vector.extract_strided_slice %7 {offsets = [0, 0, 0], sizes = [2, 8, 32], strides = [1, 1, 1]} : vector<2x16x32xf32> to vector<2x8x32xf32>
    %9 = arith.truncf %8 : vector<2x8x32xf32> to vector<2x8x32xbf16>
    %10 = vector.extract_strided_slice %7 {offsets = [0, 8, 0], sizes = [2, 8, 32], strides = [1, 1, 1]} : vector<2x16x32xf32> to vector<2x8x32xf32>
    %11 = arith.truncf %10 : vector<2x8x32xf32> to vector<2x8x32xbf16>
    %12 = tpu.iota {dimensions = array<i32: 1>} : vector<2x2x8xi32>
    %c0_6 = arith.constant 0 : index
    %c0_7 = arith.constant 0 : index
    %c0_8 = arith.constant 0 : index
    %13 = vector.load %arg2[%c0_6, %c0_7, %c0_8] : memref<2x1x8xi32, #tpu.memory_space<vmem>>, vector<2x1x8xi32>
    %14 = vector.broadcast %13 : vector<2x1x8xi32> to vector<2x2x8xi32>
    %15 = arith.cmpi eq, %12, %14 : vector<2x2x8xi32>
    %16 = arith.extui %15 : vector<2x2x8xi1> to vector<2x2x8xi32>
    %17 = arith.sitofp %16 : vector<2x2x8xi32> to vector<2x2x8xf32>
    %18 = arith.truncf %17 : vector<2x2x8xf32> to vector<2x2x8xbf16>
    "tpu.trace_start"() <{level = 10 : i32, message = "tcs,tse->tce"}> : () -> ()
    %cst_9 = arith.constant dense<0.000000e+00> : vector<2x2x32xf32>
    %19 = tpu.matmul %18, %9, %cst_9 {dimension_numbers = #tpu.dot_dimension_numbers<[2], [1], [1], [2], [0, 0, 0, 1, 1, 2], [0], [0]>} : vector<2x2x8xbf16>, vector<2x8x32xbf16>, vector<2x2x32xf32> -> vector<2x2x32xf32>
    "tpu.trace_stop"() : () -> ()
    %cst_10 = arith.constant 2.500000e-01 : f32
    %20 = vector.broadcast %cst_10 : f32 to vector<2x2x32xf32>
    %21 = arith.mulf %19, %20 : vector<2x2x32xf32>
    %22 = arith.truncf %21 : vector<2x2x32xf32> to vector<2x2x32xbf16>
    "tpu.trace_start"() <{level = 10 : i32, message = "tqe,tce->tqc"}> : () -> ()
    %cst_11 = arith.constant dense<0.000000e+00> : vector<2x8x2xf32>
    %23 = tpu.matmul %11, %22, %cst_11 {dimension_numbers = #tpu.dot_dimension_numbers<[2], [2], [1], [1], [0, 0, 0, 1, 1, 1], [0], [0]>} : vector<2x8x32xbf16>, vector<2x2x32xbf16>, vector<2x8x2xf32> -> vector<2x8x2xf32>
    "tpu.trace_stop"() : () -> ()
    %24 = arith.mulf %21, %21 : vector<2x2x32xf32>
    %cst_12 = arith.constant dense<0.000000e+00> : vector<2x2xf32>
    %25 = vector.multi_reduction <add>, %24, %cst_12 [2] : vector<2x2x32xf32> to vector<2x2xf32>
    %cst_13 = arith.constant 2.000000e+00 : f32
    %26 = vector.broadcast %cst_13 : f32 to vector<2x8x2xf32>
    %27 = arith.mulf %26, %23 : vector<2x8x2xf32>
    %28 = vector.shape_cast %25 : vector<2x2xf32> to vector<2x1x2xf32>
    %29 = vector.broadcast %28 : vector<2x1x2xf32> to vector<2x8x2xf32>
    %30 = arith.subf %27, %29 : vector<2x8x2xf32>
    %31 = tpu.iota {dimensions = array<i32: 2>} : vector<2x8x2xi32>
    %cst_14 = arith.constant dense<0xFF800000> : vector<2x8xf32>
    %32 = vector.multi_reduction <maximumf>, %30, %cst_14 [2] : vector<2x8x2xf32> to vector<2x8xf32>
    %33 = vector.shape_cast %32 : vector<2x8xf32> to vector<2x8x1xf32>
    %34 = vector.broadcast %33 : vector<2x8x1xf32> to vector<2x8x2xf32>
    %35 = arith.cmpf oge, %30, %34 : vector<2x8x2xf32>
    %c2_i32 = arith.constant 2 : i32
    %36 = vector.broadcast %c2_i32 : i32 to vector<2x8x2xi32>
    %37 = arith.select %35, %31, %36 : vector<2x8x2xi1>, vector<2x8x2xi32>
    %cst_15 = arith.constant dense<2147483647> : vector<2x8xi32>
    %38 = vector.multi_reduction <minsi>, %37, %cst_15 [2] : vector<2x8x2xi32> to vector<2x8xi32>
    %39 = vector.shape_cast %38 : vector<2x8xi32> to vector<2x8x1xi32>
    %c0_16 = arith.constant 0 : index
    %c0_17 = arith.constant 0 : index
    %c0_18 = arith.constant 0 : index
    %40 = vector.load %arg3[%c0_16, %c0_17, %c0_18] : memref<2x8x1xi32, #tpu.memory_space<vmem>>, vector<2x8x1xi32>
    %41 = arith.cmpi eq, %39, %40 : vector<2x8x1xi32>
    %42 = arith.extui %41 : vector<2x8x1xi1> to vector<2x8x1xi32>
    %43 = arith.sitofp %42 : vector<2x8x1xi32> to vector<2x8x1xf32>
    %c0_19 = arith.constant 0 : index
    %c0_20 = arith.constant 0 : index
    %c0_21 = arith.constant 0 : index
    %44 = vector.load %arg6[%c0_19, %c0_20, %c0_21] : memref<2x8x1xf32, #tpu.memory_space<vmem>>, vector<2x8x1xf32>
    tpu.vector_store %arg6[%c0_19, %c0_20, %c0_21], %43 {strides = array<i32>} : memref<2x8x1xf32, #tpu.memory_space<vmem>>, vector<2x8x1xf32>,
    return
  }
  func.func @transform_0(%arg0: i32) -> (i32, i32, i32) {
    %c0_i32 = arith.constant 0 : i32
    %c0_i32_0 = arith.constant 0 : i32
    %c0_i32_1 = arith.constant 0 : i32
    return %arg0, %c0_i32, %c0_i32_0 : i32, i32, i32
  }
  func.func @transform_1(%arg0: i32) -> (i32, i32, i32) {
    %c0_i32 = arith.constant 0 : i32
    %c0_i32_0 = arith.constant 0 : i32
    %c0_i32_1 = arith.constant 0 : i32
    return %arg0, %c0_i32, %c0_i32_0 : i32, i32, i32
  }
  func.func @transform_2(%arg0: i32) -> (i32, i32, i32) {
    %c0_i32 = arith.constant 0 : i32
    %c0_i32_0 = arith.constant 0 : i32
    %c0_i32_1 = arith.constant 0 : i32
    return %arg0, %c0_i32, %c0_i32_0 : i32, i32, i32
  }
  func.func @transform_3(%arg0: i32) -> (i32, i32) {
    %c0_i32 = arith.constant 0 : i32
    %c0_i32_0 = arith.constant 0 : i32
    %c0_i32_1 = arith.constant 0 : i32
    return %c0_i32, %c0_i32_0 : i32, i32
  }
  func.func @transform_4(%arg0: i32) -> (i32, i32) {
    %c0_i32 = arith.constant 0 : i32
    %c0_i32_0 = arith.constant 0 : i32
    %c0_i32_1 = arith.constant 0 : i32
    return %c0_i32, %c0_i32_0 : i32, i32
  }
  func.func @transform_5(%arg0: i32) -> (i32, i32, i32) {
    %c0_i32 = arith.constant 0 : i32
    %c0_i32_0 = arith.constant 0 : i32
    %c0_i32_1 = arith.constant 0 : i32
    return %arg0, %c0_i32, %c0_i32_0 : i32, i32, i32
  }
}

</mosaic_0001>

<bundles_post_ra>
// kernel: _meta_forward.1
= control target key start
LH: loop header
LB: loop body
LE: loop exit
PB: predicated region body
PF: predicated region fallthrough
CT: control target
= control target key end

     0   :  { %vm58_vm0 = vcmask 261120   ;;  %v496_v4 = vmov 0.0   ;;  %vm497_vm1 = vmmov 0   ;;  %v118_v5 = vlaneseq  ;;  %s589_s3 = inlined_call_operand.vmem [shape: bf16[32,32], index: 3, kind: input, shape index: {}]   ;;  %s590_s0 = inlined_call_operand.vmem [shape: bf16[2,16,32], index: 0, kind: input, shape index: {}]   ;;  %s591_s1 = inlined_call_operand.vmem [shape: s32[2,1,8], index: 1, kind: input, shape index: {}]   ;;  %s592_s4 = inlined_call_operand.vmem [shape: f32[1,32], index: 4, kind: input, shape index: {}]   ;;  %s593_s2 = inlined_call_operand.vmem [shape: s32[2,8,1], index: 2, kind: input, shape index: {}]   ;;  %s594_s5 = inlined_call_operand.vmem [shape: f32[2,8,1], index: 5, kind: output, shape index: {}]  }
   0x1   :  { %v492_v0 = vld [vmem:[%s589_s3] sm:$0xff]   ;;  %v493_v1 = vld [vmem:[%s589_s3 + $0x8] sm:$0xff]   ;;  %466 = vmatprep.subr.bf16.mxu1 %v496_v4  ;;  %468 = vmatprep.mubr.msk.bf16.mxu1 %vm497_vm1, %v496_v4  ;;  %vm142_vm3 = vcmask 1043456   ;;  %vm138_vm4 = vcmask 64512   ;;  %vm330_vm6 = vcmask 254976   ;;  %vm373_vm7 = vcmask 15360  }
   0x2   :  { %458 = vmatprep.subr.bf16.mxu0 %v492_v0  ;;  %v494_v2 = vld [vmem:[%s590_s0] sm:$0xff]   ;;  %v495_v3 = vld [vmem:[%s590_s0 + $0x8] sm:$0xff]   ;;  %v119_v6 = vshrl.u32 %v118_v5, 7  ;;  %v342_v46 = vand.u32 127, %v118_v5  ;;  %vm422_vm12 = vcmask 7168  }
   0x3   :  { %459 = vmatpush3.bf16.msra.mxu0 %v492_v0  ;;  %462 = vmatprep.mubr.msk.bf16.mxu0 %vm58_vm0, %v494_v2  ;;  %v436_v7 = vld [vmem:[%s591_s1] ss:$0 sm:$0xff]  ;;  %v437_v19 = vld [vmem:[%s591_s1 + $0x1] ss:$0 sm:$0xff] }
   0x4   :  { %460 = vmatprep.subr.bf16.mxu0 %v493_v1  ;;  %v429_v8 = vld [vmem:[%s592_s4] ss:$0 sm:$0xff]  ;;  %vm130_vm2 = vcmp.eq.s32.totalorder %v119_v6, %v436_v7  ;;  %vm131_vm5 = vcmp.eq.s32.totalorder %v119_v6, %v437_v19  ;;  %v345_v47 = vsub.s32 %v342_v46, %v119_v6 }
   0x5   :  { %v438_v16 = vsel %vm130_vm2, 1.0, %v496_v4  ;;  %v439_v24 = vsel %vm131_vm5, 1.0, %v496_v4 }
   0x6   :  { %v136_v22 = vpack.c.bf16 %v438_v16, %v438_v16  ;;  %v137_v25 = vpack.c.bf16 %v439_v24, %v439_v24 }
   0x7   :  { %461 = vmatpush3.bf16.msra.mxu0 %v493_v1 }
   0x8   :  { %478 = vmatprep.subr.bf16.mxu0 %v496_v4 }
   0xa   :  { %463 = vmatmul.mubr.msk.bf16.vlgmr.msra.gmra.mrb[0].mxu0 %vm58_vm0, %v495_v3 }
   0xb   :  { %480 = vmatprep.mubr.msk.bf16.mxu0 %vm497_vm1, %v496_v4 }
  0xdd   :  { %v464_v9 = vpop.f32.mrb[0].mxu0 }
  0xde   :  { %v99_v10 = vpop.f32.mrb[1].mxu0  ;;  %v108_v11 = vadd.f32 %v464_v9, %v429_v8 }
  0xdf   :  { %v100_v12 = vadd.f32 %v429_v8, %v99_v10  ;;  %v465_v13 = vpop.f32.mrb[2].mxu0 }
  0xe0   :  { %v111_v14 = vadd.f32 %v465_v13, %v429_v8  ;;  %v102_v15 = vpop.f32.mrb[3].mxu0  ;;  %v115_v20 = vpack.c.bf16 %v108_v11, %v108_v11 }
  0xe1   :  { %v114_v17 = vpack.c.bf16 %v100_v12, %v100_v12  ;;  %v103_v18 = vadd.f32 %v429_v8, %v102_v15 }
  0xe2   :  { %v190_v23 = vsel %vm142_vm3, %v115_v20, 0  ;;  %v117_v45 = vpack.c.bf16 %v111_v14, %v111_v14 }
  0xe3   :  { %v144_v21 = vsel %vm142_vm3, %v114_v17, 0  ;;  %v116_v39 = vpack.c.bf16 %v103_v18, %v103_v18 }
  0xe4   :  { %467 = vmatpush3.bf16.msra.mxu1 %v144_v21 }
  0xe5   :  { %472 = vmatprep.subr.bf16.mxu1 %v496_v4 }
  0xe7   :  { %469 = vmatmul.mubr.msk.bf16.vlgmr.msra.gmra.mrb[0].mxu1 %vm138_vm4, %v136_v22 }
  0xe8   :  { %473 = vmatpush3.bf16.msra.mxu1 %v190_v23  ;;  %474 = vmatprep.mubr.msk.bf16.mxu1 %vm497_vm1, %v496_v4 }
  0xe9   :  { %484 = vmatprep.subr.bf16.mxu1 %v496_v4 }
  0xef   :  { %475 = vmatmul.mubr.msk.bf16.vlgmr.msra.gmra.mrb[4].mxu1 %vm138_vm4, %v137_v25  ;;  %v414_v25 = vld [vmem:[%s593_s2] sm:$0xff] }
  0xf0   :  { %486 = vmatprep.mubr.msk.bf16.mxu1 %vm497_vm1, %v496_v4 }
 0x1ba   :  { %v180_v26 = vpop.f32.mrb[0].mxu1 }
 0x1bb   :  { %v232_v27 = vmul.f32 0.25, %v180_v26  ;;  %v470_v28 = vpop.f32.mrb[1].mxu1 }
 0x1bc   :  { %v183_v29 = vpop.f32.mrb[2].mxu1 }
 0x1bd   :  { %v234_v30 = vpack.c.bf16 %v232_v27, %v232_v27  ;;  %v471_v31 = vpop.f32.mrb[3].mxu1  ;;  %v328_v32 = vmul.f32 %v232_v27, %v232_v27 }
 0x1bf   :  { %v331_v33 = vsel %vm330_vm6, %v328_v32, 0.0  ;;  %v240_v34 = vsel %vm58_vm0, %v234_v30, 0  ;;  %v415_v32 = vld [vmem:[%s593_s2 + $0x8] sm:$0xff] }
 0x1c0   :  { %332 = vadd.xlane.f32.xlu0 %v331_v33  ;;  %479 = vmatpush3.bf16.xpose.msra.mxu0 %v240_v34 }
 0x1c2   :  { %v226_v35 = vpop.f32.mrb[4].mxu1 }
 0x1c3   :  { %v233_v36 = vmul.f32 0.25, %v226_v35  ;;  %v476_v37 = vpop.f32.mrb[5].mxu1 }
 0x1c4   :  { %v229_v38 = vpop.f32.mrb[6].mxu1 }
 0x1c5   :  { %v235_v40 = vpack.c.bf16 %v233_v36, %v233_v36  ;;  %v477_v41 = vpop.f32.mrb[7].mxu1  ;;  %v329_v42 = vmul.f32 %v233_v36, %v233_v36 }
 0x1c7   :  { %481 = vmatmul.mubr.msk.bf16.vlgmr.msra.gmra.mrb[4].mxu0 %vm58_vm0, %v116_v39  ;;  %v334_v43 = vsel %vm330_vm6, %v329_v42, 0.0  ;;  %v286_v44 = vsel %vm58_vm0, %v235_v40, 0 }
 0x1c8   :  { %335 = vadd.xlane.f32.xlu0 %v334_v43  ;;  %485 = vmatpush3.bf16.xpose.msra.mxu1 %v286_v44 }
 0x1cf   :  { %487 = vmatmul.mubr.msk.bf16.vlgmr.msra.gmra.mrb[8].mxu1 %vm58_vm0, %v117_v45 }
 0x24d   :  { %v333_v48 = vpop.xlane.xlu0 %332 }
 0x24e   :  { %v346_v50 = vrot.slane %v333_v48, %v345_v47 }
 0x255   :  { %v336_v57 = vpop.xlane.xlu0 %335 }
 0x256   :  { %v350_v59 = vrot.slane %v336_v57, %v345_v47 }
 0x29a   :  { %v276_v49 = vpop.f32.mrb[4].mxu0 }
 0x29b   :  { %v337_v51 = vmul.f32 2.0, %v276_v49  ;;  %v482_v52 = vpop.f32.mrb[5].mxu0 }
 0x29c   :  { %v279_v53 = vpop.f32.mrb[6].mxu0 }
 0x29d   :  { %v483_v54 = vpop.f32.mrb[7].mxu0  ;;  %v371_v55 = vsub.f32 %v337_v51, %v346_v50 }
 0x29f   :  { %v374_v56 = vsel %vm373_vm7, %v371_v55, -inf }
 0x2a0   :  { %375 = vmax.xlane.f32.xlu1 %v374_v56 }
 0x2a2   :  { %v322_v58 = vpop.f32.mrb[8].mxu1 }
 0x2a3   :  { %v338_v60 = vmul.f32 2.0, %v322_v58  ;;  %v488_v61 = vpop.f32.mrb[9].mxu1 }
 0x2a4   :  { %v325_v62 = vpop.f32.mrb[10].mxu1 }
 0x2a5   :  { %v489_v63 = vpop.f32.mrb[11].mxu1  ;;  %v372_v0 = vsub.f32 %v338_v60, %v350_v59 }
 0x2a7   :  { %v377_v1 = vsel %vm373_vm7, %v372_v0, -inf }
 0x2a8   :  { %378 = vmax.xlane.f32.xlu1 %v377_v1 }
 0x32d   :  { %v376_v2 = vpop.xlane.xlu1 %375 }
 0x32e   :  { %vm380_vm8 = vcmp.ge.f32.partialorder %v371_v55, %v376_v2 }
 0x32f   :  { %v382_v3 = vsel %vm380_vm8, %v342_v46, 2 }
 0x330   :  { %v384_v5 = vsel %vm373_vm7, %v382_v3, 2147483647 }
 0x331   :  { %v386_v6 = vshra.s32 %v384_v5, 16  ;;  %v385_v13 = vand.u32 65535, %v384_v5 }
 0x333   :  { %v388_v7 = vcvt.s32.f32 %v386_v6  ;;  %v387_v15 = vcvt.s32.f32 %v385_v13 }
 0x335   :  { %389 = vmin.xlane.f32.xlu0 %v388_v7  ;;  %v379_v8 = vpop.xlane.xlu1 %378 }
 0x336   :  { %vm381_vm9 = vcmp.ge.f32.partialorder %v372_v0, %v379_v8 }
 0x337   :  { %v383_v9 = vsel %vm381_vm9, %v342_v46, 2 }
 0x338   :  { %v399_v10 = vsel %vm373_vm7, %v383_v9, 2147483647 }
 0x339   :  { %v401_v11 = vshra.s32 %v399_v10, 16  ;;  %v400_v17 = vand.u32 65535, %v399_v10 }
 0x33b   :  { %v403_v12 = vcvt.s32.f32 %v401_v11  ;;  %v402_v19 = vcvt.s32.f32 %v400_v17 }
 0x33d   :  { %404 = vmin.xlane.f32.xlu1 %v403_v12 }
 0x3c2   :  { %v390_v14 = vpop.xlane.xlu0 %389 }
 0x3c3   :  { %vm391_vm10 = vcmp.eq.f32.partialorder %v388_v7, %v390_v14  ;;  %v396_v21 = vcvt.f32.s32 %v390_v14 }
 0x3c4   :  { %v392_v16 = vsel %vm391_vm10, %v387_v15, inf }
 0x3c5   :  { %393 = vmin.xlane.f32.xlu0 %v392_v16  ;;  %v397_v23 = vshll.u32 %v396_v21, 16 }
 0x3ca   :  { %v405_v18 = vpop.xlane.xlu1 %404 }
 0x3cb   :  { %vm406_vm11 = vcmp.eq.f32.partialorder %v403_v12, %v405_v18  ;;  %v411_v27 = vcvt.f32.s32 %v405_v18 }
 0x3cc   :  { %v407_v20 = vsel %vm406_vm11, %v402_v19, inf }
 0x3cd   :  { %408 = vmin.xlane.f32.xlu1 %v407_v20  ;;  %v412_v30 = vshll.u32 %v411_v27, 16 }
 0x452   :  { %v394_v22 = vpop.xlane.xlu0 %393 }
 0x453   :  { %v395_v24 = vcvt.f32.s32 %v394_v22 }
 0x455   :  { %v398_v26 = vadd.s32 %v397_v23, %v395_v24 }
 0x457   :  { %vm416_vm13 = vcmp.eq.s32.totalorder %v398_v26, %v414_v25 }
 0x458   :  { %v444_v28 = vsel %vm416_vm13, 1.0, %v496_v4 }
 0x459   :  { %423 = vst.msk [vmem:[%s594_s5] sm:$0xff] %vm422_vm12, %v444_v28 }
 0x45a   :  { %v409_v29 = vpop.xlane.xlu1 %408 }
 0x45b   :  { %v410_v31 = vcvt.f32.s32 %v409_v29 }
 0x45d   :  { %v413_v33 = vadd.s32 %v412_v30, %v410_v31 }
 0x45f   :  { %vm417_vm14 = vcmp.eq.s32.totalorder %v413_v33, %v415_v32 }
 0x460   :  { %v445_v34 = vsel %vm417_vm14, 1.0, %v496_v4 }
 0x461   :  { %424 = vst.msk [vmem:[%s594_s5 + $0x8] sm:$0xff] %vm422_vm12, %v445_v34 }

</bundles_post_ra>
